<compile_context>
chip_gen: v6e
topology: v6e:2x2x1
jax: 0.10.0
libtpu: 0.0.40
codegen_flags: <defaults>
</compile_context>

<pallas_src>
import functools
import math

import jax
import jax.numpy as jnp
from jax import lax
from jax.experimental import pallas as pl
from jax.experimental.pallas import tpu as pltpu


# ----------------------------------------------------------------------------
# helpers
# ----------------------------------------------------------------------------
def _fast_recip(d):
    # EUP rcp (otherwise-idle slot) + one Newton-Raphson step for ~f32 accuracy.
    r = pl.reciprocal(d, approx=True)
    return r * (2.0 - d * r)


def _round_up(n, m):
    return ((n + m - 1) // m) * m


def _tpu_topology():
    """(physical VMEM bytes, TensorCores per chip) with safe fallbacks."""
    vmem = 64 << 20
    try:
        vmem = int(pltpu.get_tpu_info().vmem_capacity_bytes)
    except Exception:
        pass
    n_tc = 1
    try:
        kind = jax.devices()[0].device_kind.lower()
        if any(tag in kind for tag in ("v7", "v4", "v5p")):
            n_tc = 2
    except Exception:
        pass
    return vmem, n_tc


# ----------------------------------------------------------------------------
# kernels
# ----------------------------------------------------------------------------
def _full_softmax_kernel(x_ref, o_ref):
    # Mask-free path: softmax over every column of the block.
    x = x_ref[...].astype(jnp.float32)
    m = jnp.max(x, axis=-1, keepdims=True)
    e = jnp.exp(x - m)
    denom = jnp.sum(e, axis=-1, keepdims=True)
    o_ref[...] = (e * _fast_recip(denom)).astype(o_ref.dtype)


def _aligned_slice_softmax_kernel(x_ref, o_ref, *, start, end, feat):
    # start/end are 128-aligned (or end == feat): static ref slices stay on
    # lane-tile boundaries; exp/reductions only touch the slice, the
    # pass-through columns are straight native-dtype copies.
    xs = x_ref[:, start:end].astype(jnp.float32)
    m = jnp.max(xs, axis=-1, keepdims=True)
    e = jnp.exp(xs - m)
    denom = jnp.sum(e, axis=-1, keepdims=True)
    o_ref[:, start:end] = (e * _fast_recip(denom)).astype(o_ref.dtype)
    if start > 0:
        o_ref[:, :start] = x_ref[:, :start]
    if end < feat:
        o_ref[:, end:] = x_ref[:, end:]


def _masked_softmax_kernel(x_ref, o_ref, *, start, end):
    # Generic sliced softmax on the block; mask fused into the exp argument.
    # Pass-through lanes are written from the original-dtype value (only the
    # exp path is upcast to f32).
    x = x_ref[...]
    xf = x.astype(jnp.float32)
    col = lax.broadcasted_iota(jnp.int32, xf.shape, xf.ndim - 1)
    mask = (col >= start) & (col < end)
    xm = jnp.where(mask, xf, -jnp.inf)
    m = jnp.max(xm, axis=-1, keepdims=True)
    e = jnp.exp(xm - m)
    denom = jnp.sum(e, axis=-1, keepdims=True)
    sm = e * _fast_recip(denom)
    o_ref[...] = jnp.where(mask, sm.astype(o_ref.dtype), x)


def _packed_sliced_softmax_kernel(x_ref, o_ref, *, seg, start, end):
    # x_ref: (TR, 128); each 128-lane row packs 128 // seg original rows of
    # width `seg` (seg divides 128 -> power of two).  Softmax runs inside every
    # aligned seg-lane segment, restricted to segment columns [start, end).
    x = x_ref[...]
    xf = x.astype(jnp.float32)
    lanes = xf.shape[-1]
    lane = lax.broadcasted_iota(jnp.int32, xf.shape, xf.ndim - 1)

    full = (start == 0) and (end == seg)
    if full:
        xm = xf
    else:
        seg_col = lane & (seg - 1)
        mask = (seg_col >= start) & (seg_col < end)
        xm = jnp.where(mask, xf, -jnp.inf)   # single masked f32 copy

    def seg_allreduce(v, combine):
        # Hypercube all-reduce within each aligned seg-lane segment: partner
        # of lane i at step s is i ^ s, reached with two XLU rolls + a select.
        s = 1
        while s < seg:
            fwd = pltpu.roll(v, shift=lanes - s, axis=1)   # v[lane + s]
            bwd = pltpu.roll(v, shift=s, axis=1)           # v[lane - s]
            v = combine(v, jnp.where((lane & s) == 0, fwd, bwd))
            s *= 2
        return v

    m = seg_allreduce(xm, jnp.maximum)       # per-segment max, broadcast
    e = jnp.exp(xm - m)                      # out-of-slice lanes -> exp(-inf)=0
    denom = seg_allreduce(e, jnp.add)        # per-segment sum, broadcast
    sm = e * _fast_recip(denom)
    if full:
        o_ref[...] = sm.astype(o_ref.dtype)
    else:
        o_ref[...] = jnp.where(mask, sm.astype(o_ref.dtype), x)


# ----------------------------------------------------------------------------
# tile sizing
# ----------------------------------------------------------------------------
def _pick_tile_rows(rows, feat_k, itemsize):
    """Row-tile size from the per-generation VMEM budget (no fixed row cap).

    Returns (tile_rows, vmem_limit_bytes, fits).  `fits` is False when even an
    8-row block (double-buffered in+out + f32 temps) exceeds the budget.
    Multi-TC chips get >=2 grid steps per core only when there is enough work.
    """
    vmem_phys, n_tc = _tpu_topology()
    vmem_limit = min(vmem_phys, max(32 << 20, min(96 << 20, (vmem_phys * 3) // 4)))
    # per-row footprint: 2x double-buffered in+out blocks + ~6 live f32 temps
    per_row = feat_k * (4 * itemsize + 6 * 4)
    budget = vmem_limit // 2                       # headroom for Mosaic scratch
    if per_row * 8 > budget:
        return 8, vmem_limit, False
    tr_budget = budget // per_row
    tr_cap = max(8, (8 << 20) // max(feat_k * itemsize, 1))  # <=~8 MiB input block
    tr = min(tr_budget, tr_cap)
    tr -= tr % 8
    tr = max(tr, 8)
    if rows <= 8:
        return rows, vmem_limit, True
    tr = min(tr, _round_up(rows, 8))
    # Only 2-TC chips benefit from splitting; keep >=2 steps per core so each
    # core still pipelines, but never split tiny (<1 MiB) problems.
    if n_tc >= 2 and rows * feat_k * itemsize > (1 << 20):
        min_steps = 2 * n_tc
        tr = min(tr, max(8, _round_up(pl.cdiv(rows, min_steps), 8)))
    return tr, vmem_limit, True


# ----------------------------------------------------------------------------
# wrapper
# ----------------------------------------------------------------------------
def sliced_softmax(x, dim=-1, start=None, end=None):
    """Pallas TPU implementation of SlicedSoftmax.forward (dim == -1 only)."""
    assert dim in (-1, x.ndim - 1), "kernel supports softmax over the last dim"
    orig_shape = x.shape
    feat = orig_shape[-1]
    rows = math.prod(orig_shape[:-1])

    # Normalize torch-style `x[..., start:end]` bounds.
    if start is None:
        s, e = 0, feat
    else:
        s = start if start >= 0 else start + feat
        e = feat if end is None else (end if end >= 0 else end + feat)
        s = max(0, min(s, feat))
        e = max(s, min(e, feat))

    if rows == 0 or feat == 0 or s >= e:
        # Empty input or empty slice: pure pass-through (avoid 0-wide NaN).
        return x

    x2 = x.reshape(rows, feat)
    itemsize = jnp.dtype(x.dtype).itemsize

    # Lane packing for small F: fold G = 128 // feat rows into each 128-lane
    # row so loads/stores/vregs are lane-dense.  Pad rows if needed so this
    # path is always taken for small F (narrow-lane stores are ~4.5x slower).
    G = 128 // feat if (feat < 128 and 128 % feat == 0) else 1

    use_alias = False
    row_pad = 0
    if G > 1:
        rows_p = _round_up(rows, G)
        row_pad = rows_p - rows
        if row_pad:
            x2 = jnp.pad(x2, ((0, row_pad), (0, 0)))
        rows_k, feat_k = rows_p // G, feat * G
        x_k = x2.reshape(rows_k, feat_k)
        col_block, col_index = feat_k, 0
        kernel = functools.partial(
            _packed_sliced_softmax_kernel, seg=feat, start=s, end=e)
    else:
        rows_k, x_k = rows, x2
        # Slice-only DMA path: a 128-aligned superset [s0, e0) of the slice,
        # whose offset lands on a block boundary, lets BlockSpecs cover only
        # those columns; input_output_aliases keeps pass-through columns in
        # place without ever DMA-ing them.
        s0 = (s // 128) * 128
        e0 = min(_round_up(e, 128), feat)
        W0 = e0 - s0
        if 0 < W0 < feat and W0 % 128 == 0 and s0 % W0 == 0:
            use_alias = True
            feat_k, col_block, col_index = W0, W0, s0 // W0
            if s == s0 and e == e0:
                kernel = _full_softmax_kernel
            else:
                kernel = functools.partial(
                    _masked_softmax_kernel, start=s - s0, end=e - s0)
        else:
            feat_k, col_block, col_index = feat, feat, 0
            if s == 0 and e == feat:
                kernel = _full_softmax_kernel
            elif s % 128 == 0 and (e % 128 == 0 or e == feat):
                kernel = functools.partial(
                    _aligned_slice_softmax_kernel, start=s, end=e, feat=feat)
            else:
                kernel = functools.partial(_masked_softmax_kernel, start=s, end=e)

    tr, vmem_limit, fits = _pick_tile_rows(rows_k, feat_k, itemsize)
    if not fits:
        # TODO(synk): add a column-tiled two-pass Pallas softmax for feature
        # dims too wide for a single VMEM block (relevant on v7x's 64 MiB VMEM).
        if s == 0 and e == feat:
            return jax.nn.softmax(x, axis=-1)
        sl = jax.nn.softmax(x[..., s:e], axis=-1)
        return jnp.concatenate((x[..., :s], sl, x[..., e:]), axis=-1)

    grid = (pl.cdiv(rows_k, tr),)   # ragged last block is fine: rows independent

    def _index_map_factory(cidx):
        def index_map(i):
            return (i, cidx)
        return index_map

    block_spec = pl.BlockSpec((tr, col_block), _index_map_factory(col_index))

    call_kwargs = {}
    if use_alias:
        out_shape = jax.ShapeDtypeStruct((rows_k, feat), x.dtype)
        call_kwargs["input_output_aliases"] = {0: 0}
    else:
        out_shape = jax.ShapeDtypeStruct((rows_k, feat_k), x.dtype)

    out_k = pl.pallas_call(
        kernel,
        out_shape=out_shape,
        grid_spec=pltpu.PrefetchScalarGridSpec(
            num_scalar_prefetch=0,
            grid=grid,
            in_specs=[block_spec],
            out_specs=block_spec,
        ),
        compiler_params=pltpu.CompilerParams(
            dimension_semantics=("parallel",),
            vmem_limit_bytes=vmem_limit,
        ),
        **call_kwargs,
    )(x_k)

    if G > 1:
        out2 = out_k.reshape(rows_k * G, feat)
        if row_pad:
            out2 = out2[:rows]
        return out2.reshape(orig_shape)
    return out_k.reshape(orig_shape)


# ----------------------------------------------------------------------------
# reference + self-test
# ----------------------------------------------------------------------------
def _reference(x, start=None, end=None):
    """Pure-JAX reference mirroring the PyTorch forward."""
    if start is not None:
        sl = jax.nn.softmax(x[..., start:end], axis=-1)
        return jnp.concatenate((x[..., :start], sl, x[..., end:]), axis=-1)
    return jax.nn.softmax(x, axis=-1)


def _check(name, out, ref, atol=1e-4, rtol=1e-4):
    assert out.shape == ref.shape and out.dtype == ref.dtype, name
    assert jnp.allclose(out, ref, atol=atol, rtol=rtol), f"{name} mismatch"


if __name__ == "__main__":
    key = jax.random.PRNGKey(0)
    keys = jax.random.split(key, 6)

    # Shipped-config shape: (batch=2, channels=4, H=16, W=16).
    x = jax.random.normal(keys[0], (2, 4, 16, 16), dtype=jnp.float32)

    # 1. Sliced softmax over columns [4, 12) -> lane-packed kernel.
    out = jax.block_until_ready(sliced_softmax(x, dim=-1, start=4, end=12))
    _check("packed sliced", out, _reference(x, 4, 12))

    # 2. start=None -> plain softmax (lane-packed, mask-free path).
    out = jax.block_until_ready(sliced_softmax(x))
    _check("packed full", out, _reference(x))

    # 3. rows % G != 0 -> row padding keeps the lane-packed path.
    xp = jax.random.normal(keys[1], (3, 5, 16), dtype=jnp.float32)
    out = jax.block_until_ready(sliced_softmax(xp, dim=-1, start=2, end=10))
    _check("packed padded rows", out, _reference(xp, 2, 10))

    # 4. bf16 input on the packed path (pass-through stays exact, slice ~f32).
    xb = jax.random.normal(keys[1], (2, 4, 16, 16), dtype=jnp.bfloat16)
    out = jax.block_until_ready(sliced_softmax(xb, dim=-1, start=4, end=12))
    _check("packed bf16", out, _reference(xb, 4, 12), atol=5e-2, rtol=5e-2)

    # 5. Wide, non-128-divisible feature dim -> generic masked full-width kernel.
    y = jax.random.normal(keys[2], (2, 4, 8, 160), dtype=jnp.float32)
    out = jax.block_until_ready(sliced_softmax(y, dim=-1, start=3, end=150))
    _check("generic masked", out, _reference(y, 3, 150))

    # 6. 128-aligned slice, aliasable column block -> slice-only DMA path.
    z = jax.random.normal(keys[3], (4, 8, 256), dtype=jnp.float32)
    out = jax.block_until_ready(sliced_softmax(z, dim=-1, start=0, end=128))
    _check("aliased aligned slice", out, _reference(z, 0, 128))

    # 7. Unaligned slice inside an aliasable 128-aligned superset block.
    w = jax.random.normal(keys[4], (2, 8, 512), dtype=jnp.float32)
    out = jax.block_until_ready(sliced_softmax(w, dim=-1, start=3, end=150))
    _check("aliased masked superset", out, _reference(w, 3, 150))

    # 8. Aligned slice whose offset can't alias -> aligned-slice kernel.
    out = jax.block_until_ready(sliced_softmax(w, dim=-1, start=128, end=384))
    _check("aligned slice (no alias)", out, _reference(w, 128, 384))

    # 9. Generic full softmax (feature dim >= 128, mask-free kernel).
    out = jax.block_until_ready(sliced_softmax(z))
    _check("generic full", out, _reference(z))

    # 10. Empty slice -> trace-time pass-through.
    out = jax.block_until_ready(sliced_softmax(x, dim=-1, start=5, end=5))
    _check("empty slice passthrough", out, x)

    print("KERNEL_OK")
</pallas_src>

<mosaic_0001>
module attributes {stable_mosaic.version = 11 : i64} {
  func.func @_packed_sliced_softmax_kernel(%arg0: i32, %arg1: memref<16x128xf32, #tpu.memory_space<vmem>>, %arg2: memref<16x128xf32, #tpu.memory_space<vmem>>) attributes {dimension_semantics = [#tpu.dimension_semantics<parallel>], iteration_bounds = array<i64: 1>, scalar_prefetch = 0 : i64, scratch_operands = 0 : i64, tpu.core_type = #tpu.core_type<tc>, window_params = [{transform_indices = @transform_0, window_bounds = array<i64: 16, 128>}, {transform_indices = @transform_1, window_bounds = array<i64: 16, 128>}]} {
    %c0 = arith.constant 0 : index
    %c0_0 = arith.constant 0 : index
    %0 = vector.load %arg1[%c0, %c0_0] : memref<16x128xf32, #tpu.memory_space<vmem>>, vector<16x128xf32>
    %1 = tpu.iota {dimensions = array<i32: 1>} : vector<16x128xi32>
    %c15_i32 = arith.constant 15 : i32
    %2 = vector.broadcast %c15_i32 : i32 to vector<16x128xi32>
    %3 = arith.andi %1, %2 : vector<16x128xi32>
    %c4_i32 = arith.constant 4 : i32
    %4 = vector.broadcast %c4_i32 : i32 to vector<16x128xi32>
    %5 = arith.cmpi sge, %3, %4 : vector<16x128xi32>
    %c12_i32 = arith.constant 12 : i32
    %6 = vector.broadcast %c12_i32 : i32 to vector<16x128xi32>
    %7 = arith.cmpi slt, %3, %6 : vector<16x128xi32>
    %8 = arith.andi %5, %7 : vector<16x128xi1>
    %cst = arith.constant 0xFF800000 : f32
    %9 = vector.broadcast %cst : f32 to vector<16x128xf32>
    %10 = arith.select %8, %0, %9 : vector<16x128xi1>, vector<16x128xf32>
    %c127_i32 = arith.constant 127 : i32
    %11 = tpu.dynamic_rotate %10 by %c127_i32 dim 1 : vector<16x128xf32>, i32 -> vector<16x128xf32>
    %c1_i32 = arith.constant 1 : i32
    %12 = tpu.dynamic_rotate %10 by %c1_i32 dim 1 : vector<16x128xf32>, i32 -> vector<16x128xf32>
    %c1_i32_1 = arith.constant 1 : i32
    %13 = vector.broadcast %c1_i32_1 : i32 to vector<16x128xi32>
    %14 = arith.andi %1, %13 : vector<16x128xi32>
    %c0_i32 = arith.constant 0 : i32
    %15 = vector.broadcast %c0_i32 : i32 to vector<16x128xi32>
    %16 = arith.cmpi eq, %14, %15 : vector<16x128xi32>
    %17 = arith.select %16, %11, %12 : vector<16x128xi1>, vector<16x128xf32>
    %18 = arith.maximumf %10, %17 : vector<16x128xf32>
    %c126_i32 = arith.constant 126 : i32
    %19 = tpu.dynamic_rotate %18 by %c126_i32 dim 1 : vector<16x128xf32>, i32 -> vector<16x128xf32>
    %c2_i32 = arith.constant 2 : i32
    %20 = tpu.dynamic_rotate %18 by %c2_i32 dim 1 : vector<16x128xf32>, i32 -> vector<16x128xf32>
    %c2_i32_2 = arith.constant 2 : i32
    %21 = vector.broadcast %c2_i32_2 : i32 to vector<16x128xi32>
    %22 = arith.andi %1, %21 : vector<16x128xi32>
    %c0_i32_3 = arith.constant 0 : i32
    %23 = vector.broadcast %c0_i32_3 : i32 to vector<16x128xi32>
    %24 = arith.cmpi eq, %22, %23 : vector<16x128xi32>
    %25 = arith.select %24, %19, %20 : vector<16x128xi1>, vector<16x128xf32>
    %26 = arith.maximumf %18, %25 : vector<16x128xf32>
    %c124_i32 = arith.constant 124 : i32
    %27 = tpu.dynamic_rotate %26 by %c124_i32 dim 1 : vector<16x128xf32>, i32 -> vector<16x128xf32>
    %c4_i32_4 = arith.constant 4 : i32
    %28 = tpu.dynamic_rotate %26 by %c4_i32_4 dim 1 : vector<16x128xf32>, i32 -> vector<16x128xf32>
    %c4_i32_5 = arith.constant 4 : i32
    %29 = vector.broadcast %c4_i32_5 : i32 to vector<16x128xi32>
    %30 = arith.andi %1, %29 : vector<16x128xi32>
    %c0_i32_6 = arith.constant 0 : i32
    %31 = vector.broadcast %c0_i32_6 : i32 to vector<16x128xi32>
    %32 = arith.cmpi eq, %30, %31 : vector<16x128xi32>
    %33 = arith.select %32, %27, %28 : vector<16x128xi1>, vector<16x128xf32>
    %34 = arith.maximumf %26, %33 : vector<16x128xf32>
    %c120_i32 = arith.constant 120 : i32
    %35 = tpu.dynamic_rotate %34 by %c120_i32 dim 1 : vector<16x128xf32>, i32 -> vector<16x128xf32>
    %c8_i32 = arith.constant 8 : i32
    %36 = tpu.dynamic_rotate %34 by %c8_i32 dim 1 : vector<16x128xf32>, i32 -> vector<16x128xf32>
    %c8_i32_7 = arith.constant 8 : i32
    %37 = vector.broadcast %c8_i32_7 : i32 to vector<16x128xi32>
    %38 = arith.andi %1, %37 : vector<16x128xi32>
    %c0_i32_8 = arith.constant 0 : i32
    %39 = vector.broadcast %c0_i32_8 : i32 to vector<16x128xi32>
    %40 = arith.cmpi eq, %38, %39 : vector<16x128xi32>
    %41 = arith.select %40, %35, %36 : vector<16x128xi1>, vector<16x128xf32>
    %42 = arith.maximumf %34, %41 : vector<16x128xf32>
    %43 = arith.subf %10, %42 : vector<16x128xf32>
    %44 = math.exp %43 : vector<16x128xf32>
    %c127_i32_9 = arith.constant 127 : i32
    %45 = tpu.dynamic_rotate %44 by %c127_i32_9 dim 1 : vector<16x128xf32>, i32 -> vector<16x128xf32>
    %c1_i32_10 = arith.constant 1 : i32
    %46 = tpu.dynamic_rotate %44 by %c1_i32_10 dim 1 : vector<16x128xf32>, i32 -> vector<16x128xf32>
    %c1_i32_11 = arith.constant 1 : i32
    %47 = vector.broadcast %c1_i32_11 : i32 to vector<16x128xi32>
    %48 = arith.andi %1, %47 : vector<16x128xi32>
    %c0_i32_12 = arith.constant 0 : i32
    %49 = vector.broadcast %c0_i32_12 : i32 to vector<16x128xi32>
    %50 = arith.cmpi eq, %48, %49 : vector<16x128xi32>
    %51 = arith.select %50, %45, %46 : vector<16x128xi1>, vector<16x128xf32>
    %52 = arith.addf %44, %51 : vector<16x128xf32>
    %c126_i32_13 = arith.constant 126 : i32
    %53 = tpu.dynamic_rotate %52 by %c126_i32_13 dim 1 : vector<16x128xf32>, i32 -> vector<16x128xf32>
    %c2_i32_14 = arith.constant 2 : i32
    %54 = tpu.dynamic_rotate %52 by %c2_i32_14 dim 1 : vector<16x128xf32>, i32 -> vector<16x128xf32>
    %c2_i32_15 = arith.constant 2 : i32
    %55 = vector.broadcast %c2_i32_15 : i32 to vector<16x128xi32>
    %56 = arith.andi %1, %55 : vector<16x128xi32>
    %c0_i32_16 = arith.constant 0 : i32
    %57 = vector.broadcast %c0_i32_16 : i32 to vector<16x128xi32>
    %58 = arith.cmpi eq, %56, %57 : vector<16x128xi32>
    %59 = arith.select %58, %53, %54 : vector<16x128xi1>, vector<16x128xf32>
    %60 = arith.addf %52, %59 : vector<16x128xf32>
    %c124_i32_17 = arith.constant 124 : i32
    %61 = tpu.dynamic_rotate %60 by %c124_i32_17 dim 1 : vector<16x128xf32>, i32 -> vector<16x128xf32>
    %c4_i32_18 = arith.constant 4 : i32
    %62 = tpu.dynamic_rotate %60 by %c4_i32_18 dim 1 : vector<16x128xf32>, i32 -> vector<16x128xf32>
    %c4_i32_19 = arith.constant 4 : i32
    %63 = vector.broadcast %c4_i32_19 : i32 to vector<16x128xi32>
    %64 = arith.andi %1, %63 : vector<16x128xi32>
    %c0_i32_20 = arith.constant 0 : i32
    %65 = vector.broadcast %c0_i32_20 : i32 to vector<16x128xi32>
    %66 = arith.cmpi eq, %64, %65 : vector<16x128xi32>
    %67 = arith.select %66, %61, %62 : vector<16x128xi1>, vector<16x128xf32>
    %68 = arith.addf %60, %67 : vector<16x128xf32>
    %c120_i32_21 = arith.constant 120 : i32
    %69 = tpu.dynamic_rotate %68 by %c120_i32_21 dim 1 : vector<16x128xf32>, i32 -> vector<16x128xf32>
    %c8_i32_22 = arith.constant 8 : i32
    %70 = tpu.dynamic_rotate %68 by %c8_i32_22 dim 1 : vector<16x128xf32>, i32 -> vector<16x128xf32>
    %c8_i32_23 = arith.constant 8 : i32
    %71 = vector.broadcast %c8_i32_23 : i32 to vector<16x128xi32>
    %72 = arith.andi %1, %71 : vector<16x128xi32>
    %c0_i32_24 = arith.constant 0 : i32
    %73 = vector.broadcast %c0_i32_24 : i32 to vector<16x128xi32>
    %74 = arith.cmpi eq, %72, %73 : vector<16x128xi32>
    %75 = arith.select %74, %69, %70 : vector<16x128xi1>, vector<16x128xf32>
    %76 = arith.addf %68, %75 : vector<16x128xf32>
    %77 = tpu.reciprocal %76 {approx = true} : vector<16x128xf32> -> vector<16x128xf32>
    %78 = arith.mulf %76, %77 : vector<16x128xf32>
    %cst_25 = arith.constant 2.000000e+00 : f32
    %79 = vector.broadcast %cst_25 : f32 to vector<16x128xf32>
    %80 = arith.subf %79, %78 : vector<16x128xf32>
    %81 = arith.mulf %77, %80 : vector<16x128xf32>
    %82 = arith.mulf %44, %81 : vector<16x128xf32>
    %83 = arith.select %8, %82, %0 : vector<16x128xi1>, vector<16x128xf32>
    %c0_26 = arith.constant 0 : index
    %c0_27 = arith.constant 0 : index
    %84 = vector.load %arg2[%c0_26, %c0_27] : memref<16x128xf32, #tpu.memory_space<vmem>>, vector<16x128xf32>
    tpu.vector_store %arg2[%c0_26, %c0_27], %83 {strides = array<i32>} : memref<16x128xf32, #tpu.memory_space<vmem>>, vector<16x128xf32>,
    return
  }
  func.func @transform_0(%arg0: i32) -> (i32, i32) {
    %c0_i32 = arith.constant 0 : i32
    %c0_i32_0 = arith.constant 0 : i32
    return %arg0, %c0_i32 : i32, i32
  }
  func.func @transform_1(%arg0: i32) -> (i32, i32) {
    %c0_i32 = arith.constant 0 : i32
    %c0_i32_0 = arith.constant 0 : i32
    return %arg0, %c0_i32 : i32, i32
  }
}

</mosaic_0001>

<bundles_post_ra>
// kernel: tpu_custom_call.1
= control target key start
LH: loop header
LB: loop body
LE: loop exit
PB: predicated region body
PF: predicated region fallthrough
CT: control target
= control target key end

     0   :  { %6 = vsyncpa [#allocation3], 0  ;;  %s395_s0 = inlined_call_operand.hbm [shape: f32[16,128], index: 0, kind: input, shape index: {}]   ;;  %s396_s1 = inlined_call_operand.hbm [shape: f32[16,128], index: 1, kind: output, shape index: {}]  }
   0x1   :  { %7 = vsyncpa [#allocation4], 0  ;;  %s237_s6 = smov [#allocation2]  }
   0x2   :  { %s13_s7 = sshll.u32 %s237_s6, 4  ;;  %s14_s7 = int_to_ptr.vmem [resolvable:$true] %s13_s7 }
   0x3   :  { %s201_s8 = scalar_lea.vmem %s14_s7, 256  ;;  %p206_p1 = scmp.lt.s32.totalorder %s14_s7, %s14_s7 }
   0x4   :  { %p202_p0 = scmp.ne.s32.totalorder %s14_s7, %s201_s8  ;;  %p207_p2 = scmp.lt.s32.totalorder %s201_s8, %s201_s8 }
   0x6   :  { %p208_p3 = por %p207_p2, %p206_p1 }
   0x8   :  { %p209_p4 = pnand %p208_p3, %p202_p0 }
   0xa   :  { %212 = shalt.err (!%p209_p4)
}
   0xb   :  { %s238_s9 = smov 128   ;;  %s239_s10 = smov 8  }
   0xc   :  { %19 = dma.hbm_to_vmem [thread:$0]  %s395_s0, 256, %s14_s7, [#allocation3], %s238_s9, %s238_s9, %s239_s10  }
   0xd   :  { %233 = dma.done.wait [#allocation3], 256  }
   0xe   :  { %234 = vsyncadd [#allocation3], 4294967040  ;;  %v25_v0 = vlaneseq  ;;  %v267_v3 = vld [vmem:[#allocation2] sm:$0xff]  ;;  %v273_v5 = vld [vmem:[#allocation2 + $0x8] sm:$0xff]  ;;  %s240_s0 = smov 1   ;;  %s241_s13 = smov 127  }
   0xf   :  { %s242_s14 = smov 126   ;;  %s243_s15 = smov 2  }
  0x10   :  { %v264_v1 = vand.u32 127, %v25_v0  ;;  %s244_s16 = smov 124   ;;  %s245_s17 = smov 4  }
  0x11   :  { %s246_s18 = smov 120   ;;  %s247_s19 = smov [#allocation5]  }
  0x12   :  { %v27_v2 = vand.u32 15, %v264_v1  ;;  %v41_v8 = vand.u32 1, %v264_v1  ;;  %v55_v18 = vand.u32 2, %v264_v1  ;;  %v69_v28 = vand.u32 4, %v264_v1  ;;  %s162_s20 = sshll.u32 %s247_s19, 4  ;;  %s163_s20 = int_to_ptr.vmem [resolvable:$true] %s162_s20 }
  0x13   :  { %v83_v38 = vand.u32 8, %v264_v1  ;;  %s213_s21 = scalar_lea.vmem %s163_s20, 256  ;;  %p218_p6 = scmp.lt.s32.totalorder %s163_s20, %s163_s20 }
  0x14   :  { %vm28_vm0 = vcmp.ge.s32.totalorder %v27_v2, 4  ;;  %vm29_vm1 = vcmp.lt.s32.totalorder %v27_v2, 12  ;;  %vm294_vm3 = vcmp.eq.s32.totalorder %v41_v8, 0  ;;  %vm309_vm4 = vcmp.eq.s32.totalorder %v55_v18, 0  ;;  %p214_p5 = scmp.ne.s32.totalorder %s163_s20, %s213_s21  ;;  %p219_p7 = scmp.lt.s32.totalorder %s213_s21, %s213_s21 }
  0x15   :  { %vm269_vm2 = vmand %vm28_vm0, %vm29_vm1  ;;  %vm322_vm5 = vcmp.eq.s32.totalorder %v69_v28, 0  ;;  %vm335_vm6 = vcmp.eq.s32.totalorder %v83_v38, 0 }
  0x16   :  { %v278_v6 = vsel %vm269_vm2, %v267_v3, -inf  ;;  %v287_v7 = vsel %vm269_vm2, %v273_v5, -inf  ;;  %p220_p8 = por %p219_p7, %p218_p6 }
  0x17   :  { %37 = vrot.lane.b32.xlu1 %v278_v6, %s240_s0  ;;  %33 = vrot.lane.b32.xlu0 %v278_v6, %s241_s13 }
  0x18   :  { %p221_p9 = pnand %p220_p8, %p214_p5 }
  0x1b   :  { %39 = vrot.lane.b32.xlu1 %v287_v7, %s240_s0  ;;  %35 = vrot.lane.b32.xlu0 %v287_v7, %s241_s13 }
  0x89   :  { %v38_v10 = vpop.permute.xlu1 %37  ;;  %v34_v11 = vpop.permute.xlu0 %33 }
  0x8a   :  { %v43_v12 = vsel %vm294_vm3, %v34_v11, %v38_v10 }
  0x8b   :  { %v45_v13 = vmax.f32 %v278_v6, %v43_v12 }
  0x8d   :  { %v40_v14 = vpop.permute.xlu1 %39  ;;  %47 = vrot.lane.b32.xlu0 %v45_v13, %s242_s14  ;;  %v36_v15 = vpop.permute.xlu0 %35 }
  0x8e   :  { %v44_v16 = vsel %vm294_vm3, %v36_v15, %v40_v14 }
  0x8f   :  { %v46_v17 = vmax.f32 %v287_v7, %v44_v16 }
  0x91   :  { %51 = vrot.lane.b32.xlu0 %v45_v13, %s243_s15  ;;  %49 = vrot.lane.b32.xlu1 %v46_v17, %s242_s14 }
  0x95   :  { %53 = vrot.lane.b32.xlu1 %v46_v17, %s243_s15 }
  0xff   :  { %v48_v19 = vpop.permute.xlu0 %47 }
 0x103   :  { %v50_v21 = vpop.permute.xlu1 %49  ;;  %v52_v22 = vpop.permute.xlu0 %51 }
 0x104   :  { %v57_v23 = vsel %vm309_vm4, %v48_v19, %v52_v22 }
 0x105   :  { %v59_v24 = vmax.f32 %v45_v13, %v57_v23 }
 0x107   :  { %v54_v25 = vpop.permute.xlu1 %53  ;;  %61 = vrot.lane.b32.xlu0 %v59_v24, %s244_s16 }
 0x108   :  { %v58_v26 = vsel %vm309_vm4, %v50_v21, %v54_v25 }
 0x109   :  { %v60_v27 = vmax.f32 %v46_v17, %v58_v26 }
 0x10b   :  { %63 = vrot.lane.b32.xlu1 %v60_v27, %s244_s16  ;;  %65 = vrot.lane.b32.xlu0 %v59_v24, %s245_s17 }
 0x10f   :  { %67 = vrot.lane.b32.xlu1 %v60_v27, %s245_s17 }
 0x179   :  { %v62_v29 = vpop.permute.xlu0 %61 }
 0x17d   :  { %v64_v31 = vpop.permute.xlu1 %63  ;;  %v66_v32 = vpop.permute.xlu0 %65 }
 0x17e   :  { %v71_v33 = vsel %vm322_vm5, %v62_v29, %v66_v32 }
 0x17f   :  { %v73_v34 = vmax.f32 %v59_v24, %v71_v33 }
 0x181   :  { %v68_v35 = vpop.permute.xlu1 %67  ;;  %75 = vrot.lane.b32.xlu0 %v73_v34, %s246_s18 }
 0x182   :  { %v72_v36 = vsel %vm322_vm5, %v64_v31, %v68_v35 }
 0x183   :  { %v74_v37 = vmax.f32 %v60_v27, %v72_v36 }
 0x185   :  { %77 = vrot.lane.b32.xlu1 %v74_v37, %s246_s18  ;;  %79 = vrot.lane.b32.xlu0 %v73_v34, %s239_s10 }
 0x189   :  { %81 = vrot.lane.b32.xlu1 %v74_v37, %s239_s10 }
 0x1f3   :  { %v76_v39 = vpop.permute.xlu0 %75 }
 0x1f7   :  { %v78_v41 = vpop.permute.xlu1 %77  ;;  %v80_v42 = vpop.permute.xlu0 %79 }
 0x1f8   :  { %v85_v43 = vsel %vm335_vm6, %v76_v39, %v80_v42 }
 0x1f9   :  { %v87_v44 = vmax.f32 %v73_v34, %v85_v43 }
 0x1fb   :  { %v89_v45 = vsub.f32 %v278_v6, %v87_v44  ;;  %v82_v46 = vpop.permute.xlu1 %81 }
 0x1fc   :  { %v86_v47 = vsel %vm335_vm6, %v78_v41, %v82_v46 }
 0x1fd   :  { %v91_v48 = vmul.f32 1.442695, %v89_v45  ;;  %v88_v49 = vmax.f32 %v74_v37, %v86_v47 }
 0x1ff   :  { %185 = vpow2.f32 %v91_v48  ;;  %v90_v50 = vsub.f32 %v287_v7, %v88_v49 }
 0x201   :  { %v93_v51 = vmul.f32 1.442695, %v90_v50 }
 0x203   :  { %187 = vpow2.f32 %v93_v51 }
 0x20c   :  { %v186_v52 = vpop.eup %185 }
 0x20d   :  { %95 = vrot.lane.b32.xlu0 %v186_v52, %s241_s13 }
 0x210   :  { %v346_v53 = vpop.eup %187 }
 0x211   :  { %97 = vrot.lane.b32.xlu1 %v346_v53, %s241_s13  ;;  %99 = vrot.lane.b32.xlu0 %v186_v52, %s240_s0 }
 0x215   :  { %101 = vrot.lane.b32.xlu1 %v346_v53, %s240_s0 }
 0x27f   :  { %v96_v54 = vpop.permute.xlu0 %95 }
 0x283   :  { %v98_v55 = vpop.permute.xlu1 %97  ;;  %v100_v56 = vpop.permute.xlu0 %99 }
 0x284   :  { %v103_v57 = vsel %vm294_vm3, %v96_v54, %v100_v56 }
 0x285   :  { %v105_v58 = vadd.f32 %v186_v52, %v103_v57 }
 0x287   :  { %v102_v59 = vpop.permute.xlu1 %101  ;;  %107 = vrot.lane.b32.xlu0 %v105_v58, %s242_s14 }
 0x288   :  { %v104_v60 = vsel %vm294_vm3, %v98_v55, %v102_v59 }
 0x289   :  { %v106_v61 = vadd.f32 %v346_v53, %v104_v60 }
 0x28b   :  { %109 = vrot.lane.b32.xlu1 %v106_v61, %s242_s14  ;;  %111 = vrot.lane.b32.xlu0 %v105_v58, %s243_s15 }
 0x28f   :  { %113 = vrot.lane.b32.xlu1 %v106_v61, %s243_s15 }
 0x2f9   :  { %v108_v62 = vpop.permute.xlu0 %107 }
 0x2fd   :  { %v110_v63 = vpop.permute.xlu1 %109  ;;  %v112_v0 = vpop.permute.xlu0 %111 }
 0x2fe   :  { %v115_v1 = vsel %vm309_vm4, %v108_v62, %v112_v0 }
 0x2ff   :  { %v117_v2 = vadd.f32 %v115_v1, %v105_v58 }
 0x301   :  { %v114_v6 = vpop.permute.xlu1 %113  ;;  %119 = vrot.lane.b32.xlu0 %v117_v2, %s244_s16 }
 0x302   :  { %v116_v7 = vsel %vm309_vm4, %v110_v63, %v114_v6 }
 0x303   :  { %v118_v8 = vadd.f32 %v116_v7, %v106_v61 }
 0x305   :  { %121 = vrot.lane.b32.xlu1 %v118_v8, %s244_s16  ;;  %123 = vrot.lane.b32.xlu0 %v117_v2, %s245_s17 }
 0x309   :  { %125 = vrot.lane.b32.xlu1 %v118_v8, %s245_s17 }
 0x373   :  { %v120_v9 = vpop.permute.xlu0 %119 }
 0x377   :  { %v122_v10 = vpop.permute.xlu1 %121  ;;  %v124_v11 = vpop.permute.xlu0 %123 }
 0x378   :  { %v127_v12 = vsel %vm322_vm5, %v120_v9, %v124_v11 }
 0x379   :  { %v129_v13 = vadd.f32 %v127_v12, %v117_v2 }
 0x37b   :  { %v126_v14 = vpop.permute.xlu1 %125  ;;  %131 = vrot.lane.b32.xlu0 %v129_v13, %s246_s18 }
 0x37c   :  { %v128_v15 = vsel %vm322_vm5, %v122_v10, %v126_v14 }
 0x37d   :  { %v130_v16 = vadd.f32 %v128_v15, %v118_v8 }
 0x37f   :  { %133 = vrot.lane.b32.xlu1 %v130_v16, %s246_s18  ;;  %135 = vrot.lane.b32.xlu0 %v129_v13, %s239_s10 }
 0x383   :  { %137 = vrot.lane.b32.xlu1 %v130_v16, %s239_s10 }
 0x3ed   :  { %v132_v17 = vpop.permute.xlu0 %131 }
 0x3f1   :  { %v134_v18 = vpop.permute.xlu1 %133  ;;  %v136_v19 = vpop.permute.xlu0 %135 }
 0x3f2   :  { %v139_v20 = vsel %vm335_vm6, %v132_v17, %v136_v19 }
 0x3f3   :  { %v141_v21 = vadd.f32 %v139_v20, %v129_v13 }
 0x3f5   :  { %189 = vrcp.f32 %v141_v21  ;;  %v138_v22 = vpop.permute.xlu1 %137 }
 0x3f6   :  { %v140_v23 = vsel %vm335_vm6, %v134_v18, %v138_v22 }
 0x3f7   :  { %v142_v24 = vadd.f32 %v140_v23, %v130_v16 }
 0x3f9   :  { %191 = vrcp.f32 %v142_v24 }
 0x402   :  { %v190_v25 = vpop.eup %189 }
 0x403   :  { %v145_v26 = vmul.f32 %v190_v25, %v141_v21 }
 0x405   :  { %v147_v27 = vsub.f32 2.0, %v145_v26 }
 0x406   :  { %v192_v28 = vpop.eup %191 }
 0x407   :  { %v149_v29 = vmul.f32 %v190_v25, %v147_v27  ;;  %v146_v30 = vmul.f32 %v192_v28, %v142_v24 }
 0x409   :  { %v148_v31 = vsub.f32 2.0, %v146_v30  ;;  %v151_v32 = vmul.f32 %v186_v52, %v149_v29 }
 0x40b   :  { %v150_v33 = vmul.f32 %v192_v28, %v148_v31  ;;  %v153_v34 = vsel %vm269_vm2, %v151_v32, %v267_v3 }
 0x40c   :  { %155 = vst [vmem:[#allocation5] sm:$0xff] %v153_v34 }
 0x40d   :  { %v152_v35 = vmul.f32 %v346_v53, %v150_v33 }
 0x40f   :  { %v154_v36 = vsel %vm269_vm2, %v152_v35, %v273_v5 }
 0x410   :  { %156 = vst [vmem:[#allocation5 + $0x8] sm:$0xff] %v154_v36 }
 0x411   :  { %224 = shalt.err (!%p221_p9)
}
 0x412   :  { %168 = dma.vmem_to_hbm [thread:$0]  %s163_s20, 256, %s396_s1, [#allocation4], %s238_s9, %s238_s9, %s239_s10  }
 0x413   :  { %235 = dma.done.wait [#allocation4], 256  }
 0x414   :  { %236 = vsyncadd [#allocation4], 4294967040 }
 0x415   :  { %172 = vsyncpa [#allocation3], 1 }
 0x416   :  { %173 = vsyncpa [#allocation4], 1 }

</bundles_post_ra>
